<compile_context>
chip_gen: v5e
topology: v5e:2x2
jax: 0.10.0
libtpu: 0.0.40
codegen_flags: <defaults>
</compile_context>

<pallas_src>
import math

import jax
import jax.numpy as jnp
from jax import lax
from jax.experimental import pallas as pl
from jax.experimental.pallas import tpu as pltpu


LANE = 128          # TPU lane width: outputs / K padded to this
TM_TARGET = 512     # target M tile (multiple of 16) for large-M tiling
TM_MIN = 16         # bf16 sublane packing granularity

# (kernel_size, stride, out_channels) for the three conv layers (fixed arch).
LAYERS = ((8, 4, 32), (4, 2, 64), (3, 1, 64))


def _cdiv(a, b):
    return -(-a // b)


def _round_up(x, m):
    return _cdiv(x, m) * m


# ----------------------------------------------------------------------------
# Pallas kernel: fused (patch-tile @ weight) + bias + ReLU
#   p_ref : (TM, Kp)  bf16  -- streamed per grid step (auto double-buffered)
#   w_ref : (Kp, Np)  bf16  -- VMEM-resident (constant block index)
#   b_ref : (1,  Np)  f32   -- VMEM-resident
#   o_ref : (TM, Np)  bf16/f32 -- lane-dense (Np multiple of 128)
# ----------------------------------------------------------------------------
def _gemm_bias_relu_kernel(p_ref, w_ref, b_ref, o_ref):
    # bf16 MXU operands, f32 accumulate; epilogue stays f32 (v5e has no bf16
    # VPU path) with a single cast at the store.
    acc = jnp.dot(p_ref[...], w_ref[...], preferred_element_type=jnp.float32)
    acc = acc + b_ref[...]
    o_ref[...] = jnp.maximum(acc, 0.0).astype(o_ref.dtype)


def gemm_bias_relu(patches, w_packed, b_packed, n_valid, out_dtype):
    """ReLU(patches @ W + b) with pre-packed weights.

    patches : (M, K)   bf16  im2col rows (K = KH*KW*Cin, unpadded)
    w_packed: (Kp, Np) bf16  Kp = round_up(K, 128), Np = round_up(Cout, 128)
    b_packed: (1, Np)  f32
    returns : (M, n_valid) in out_dtype
    """
    M, K = patches.shape
    Kp, Np = w_packed.shape
    assert Kp >= K and Kp % LANE == 0 and Np % LANE == 0

    # Balanced M tiling: pick grid_m first, then the tile size (review #4/#5).
    if M >= 2 * TM_MIN:
        grid_m = _round_up(max(2, _cdiv(M, TM_TARGET)), 2)   # even: dual-TC v7x
    else:
        grid_m = 1
    TM = _round_up(_cdiv(M, grid_m), TM_MIN)
    Mp = TM * grid_m

    # Single bf16 pad covering both the M tail and the K lane padding.
    if Mp != M or Kp != K:
        patches = jnp.pad(patches, ((0, Mp - M), (0, Kp - K)))

    out_bytes = jnp.dtype(out_dtype).itemsize
    # Actual VMEM: double-buffered patch + output tiles, resident weight+bias,
    # plus modest headroom (review #9).
    vmem_need = (2 * TM * Kp * 2 + 2 * TM * Np * out_bytes
                 + Kp * Np * 2 + 8 * Np * 4)
    vmem_limit = int(min(max(vmem_need + (vmem_need >> 2) + (1 << 20), 4 << 20),
                         16 << 20))

    cost = pl.CostEstimate(
        flops=2 * M * K * n_valid,
        transcendentals=0,
        bytes_accessed=M * K * 2 + Kp * Np * 2 + M * n_valid * out_bytes,
    )

    out = pl.pallas_call(
        _gemm_bias_relu_kernel,
        out_shape=jax.ShapeDtypeStruct((Mp, Np), out_dtype),
        grid=(grid_m,),
        in_specs=[
            pl.BlockSpec((TM, Kp), lambda i: (i, 0)),   # streamed patch tiles
            pl.BlockSpec((Kp, Np), lambda i: (0, 0)),   # resident weights
            pl.BlockSpec((1, Np), lambda i: (0, 0)),    # resident bias
        ],
        out_specs=pl.BlockSpec((TM, Np), lambda i: (i, 0)),  # lane-dense stores
        compiler_params=pltpu.CompilerParams(
            dimension_semantics=("parallel",),          # dual TC on v7x
            vmem_limit_bytes=vmem_limit,
        ),
        cost_estimate=cost,
    )(patches, w_packed, b_packed)

    return out[:M, :n_valid]


# ----------------------------------------------------------------------------
# Conv2d (valid padding) + ReLU, NHWC activations, pre-packed weights
# ----------------------------------------------------------------------------
def conv2d_relu_nhwc(x, w_packed, b_packed, ksize, stride, cout, out_dtype):
    """x: (B,H,W,Cin) bf16 NHWC -> (B,OH,OW,cout) in out_dtype."""
    B, H, W, Cin = x.shape
    OH = (H - ksize) // stride + 1
    OW = (W - ksize) // stride + 1

    # im2col built directly in bf16 (single materialization; review #2).  The
    # tiled BlockSpec streams patch tiles through VMEM, so the KH*KW blow-up
    # never has to fit on chip.
    # TODO(synk): move this tap gather inside the Pallas kernel (review #1/#8)
    # to avoid materializing the inflated patch array in HBM at large batch.
    cols = []
    for kh in range(ksize):
        for kw in range(ksize):
            cols.append(
                x[:, kh: kh + stride * OH: stride,
                     kw: kw + stride * OW: stride, :]
            )
    # (B, OH, OW, KH*KW, Cin) -> (B*OH*OW, KH*KW*Cin), matching the packed
    # weight's (kh, kw, cin) -> cout ordering.
    patches = jnp.stack(cols, axis=3).reshape(B * OH * OW, ksize * ksize * Cin)

    out = gemm_bias_relu(patches, w_packed, b_packed, cout, out_dtype)
    return out.reshape(B, OH, OW, cout)


# ----------------------------------------------------------------------------
# Parameter init (matches initialize_weights_he: kaiming_uniform_ weights,
# zero bias) and one-time weight packing for the kernel.
# ----------------------------------------------------------------------------
def _kaiming_uniform(key, shape, fan_in):
    bound = math.sqrt(6.0 / fan_in)   # PyTorch kaiming_uniform_ default (a=0)
    return jax.random.uniform(key, shape, jnp.float32, -bound, bound)


def init_full_cnn_params(key, in_channels):
    keys = jax.random.split(key, len(LAYERS))
    params = {}
    cin = in_channels
    for idx, (k, _, cout) in enumerate(LAYERS, start=1):
        params[f"w{idx}"] = _kaiming_uniform(keys[idx - 1], (cout, cin, k, k),
                                             cin * k * k)
        params[f"b{idx}"] = jnp.zeros((cout,), jnp.float32)
        cin = cout
    return params


def pack_full_cnn_params(params):
    """One-time packing (review #7): (Cout,Cin,KH,KW) f32 -> (Kp,Np) bf16 with
    (kh,kw,cin)->cout ordering, K padded to a multiple of 128 (review #6),
    Cout padded to 128 lanes; bias -> (1,Np) f32."""
    packed = {}
    for idx in range(1, len(LAYERS) + 1):
        w = params[f"w{idx}"]
        b = params[f"b{idx}"]
        cout, cin, kh, kw = w.shape
        k = kh * kw * cin
        kp = _round_up(max(k, LANE), LANE)
        np_ = _round_up(max(cout, LANE), LANE)
        w_mat = jnp.transpose(w, (2, 3, 1, 0)).reshape(k, cout)
        packed[f"l{idx}"] = {
            "w": jnp.pad(w_mat.astype(jnp.bfloat16),
                         ((0, kp - k), (0, np_ - cout))),
            "b": jnp.pad(b.astype(jnp.float32), (0, np_ - cout)).reshape(1, np_),
        }
    return packed


# ----------------------------------------------------------------------------
# FullCNN forward
# ----------------------------------------------------------------------------
@jax.jit
def full_cnn_forward(packed, states):
    # states: (B, H, W, C) NHWC. PyTorch permutes to NCHW; we keep NHWC
    # internally (channels on the lane dim). Cast to bf16 once, up front.
    x = states.astype(jnp.bfloat16)
    last = len(LAYERS) - 1
    for idx, (k, s, cout) in enumerate(LAYERS):
        lp = packed[f"l{idx + 1}"]
        # conv1/conv2 emit bf16 (next layer consumes bf16 anyway); conv3 f32.
        out_dtype = jnp.float32 if idx == last else jnp.bfloat16
        x = conv2d_relu_nhwc(x, lp["w"], lp["b"], k, s, cout, out_dtype)
    # Flatten matching PyTorch: NCHW -> (B, C*H*W)
    x = jnp.transpose(x, (0, 3, 1, 2))
    return x.reshape(x.shape[0], -1)


# ----------------------------------------------------------------------------
# Pure-JAX references for correctness checks
#   compute_dtype=bfloat16 mirrors the kernel's bf16-operand / f32-accumulate /
#   bf16-activation path exactly; compute_dtype=float32 is a loose check.
# ----------------------------------------------------------------------------
def full_cnn_forward_ref(params, states, compute_dtype=jnp.float32):
    x = jnp.transpose(states, (0, 3, 1, 2))  # NHWC -> NCHW
    for idx, (_, s, _) in enumerate(LAYERS, start=1):
        w, b = params[f"w{idx}"], params[f"b{idx}"]
        x = lax.conv_general_dilated(
            x.astype(compute_dtype), w.astype(compute_dtype),
            window_strides=(s, s), padding="VALID",
            dimension_numbers=("NCHW", "OIHW", "NCHW"),
            preferred_element_type=jnp.float32)
        x = jax.nn.relu(x + b.reshape(1, -1, 1, 1).astype(jnp.float32))
    return x.reshape(x.shape[0], -1)


if __name__ == "__main__":
    key = jax.random.PRNGKey(0)
    pkey, xkey = jax.random.split(key)

    B, H, W, C = 2, 44, 44, 4   # 44x44 -> 10x10 -> 4x4 -> 2x2 spatial
    params = init_full_cnn_params(pkey, in_channels=C)
    packed = pack_full_cnn_params(params)     # one-time weight packing
    states = jax.random.normal(xkey, (B, H, W, C), dtype=jnp.float32)

    out = jax.block_until_ready(full_cnn_forward(packed, states))
    assert out.shape == (B, 64 * 2 * 2), out.shape

    # Tight check vs a reference with identical bf16-operand rounding points.
    ref_bf16 = full_cnn_forward_ref(params, states, compute_dtype=jnp.bfloat16)
    assert jnp.allclose(out, ref_bf16, rtol=1e-2, atol=1e-2), \
        "mismatch vs bf16-operand reference"

    # Loose structural check vs the full-f32 reference (bf16 rounding noise).
    ref_f32 = full_cnn_forward_ref(params, states, compute_dtype=jnp.float32)
    assert jnp.allclose(out, ref_f32, rtol=1e-1, atol=1e-1), \
        "mismatch vs f32 reference"

    print("KERNEL_OK")
</pallas_src>

<mosaic_0001>
module attributes {stable_mosaic.version = 11 : i64} {
  func.func @_gemm_bias_relu_kernel(%arg0: i32, %arg1: memref<112x256xbf16, #tpu.memory_space<vmem>>, %arg2: memref<256x128xbf16, #tpu.memory_space<vmem>>, %arg3: memref<1x128xf32, #tpu.memory_space<vmem>>, %arg4: memref<112x128xbf16, #tpu.memory_space<vmem>>) attributes {dimension_semantics = [#tpu.dimension_semantics<parallel>], iteration_bounds = array<i64: 2>, scalar_prefetch = 0 : i64, scratch_operands = 0 : i64, tpu.core_type = #tpu.core_type<tc>, window_params = [{transform_indices = @transform_0, window_bounds = array<i64: 112, 256>}, {pipeline_mode = #tpu.pipeline_mode<synchronous>, transform_indices = @transform_1, window_bounds = array<i64: 256, 128>}, {pipeline_mode = #tpu.pipeline_mode<synchronous>, transform_indices = @transform_2, window_bounds = array<i64: 1, 128>}, {transform_indices = @transform_3, window_bounds = array<i64: 112, 128>}]} {
    %c0 = arith.constant 0 : index
    %c0_0 = arith.constant 0 : index
    %0 = vector.load %arg1[%c0, %c0_0] : memref<112x256xbf16, #tpu.memory_space<vmem>>, vector<112x256xbf16>
    %c0_1 = arith.constant 0 : index
    %c0_2 = arith.constant 0 : index
    %1 = vector.load %arg2[%c0_1, %c0_2] : memref<256x128xbf16, #tpu.memory_space<vmem>>, vector<256x128xbf16>
    %cst = arith.constant dense<0.000000e+00> : vector<112x128xf32>
    %2 = tpu.matmul %0, %1, %cst {dimension_numbers = #tpu.dot_dimension_numbers<[1], [0], [0], [1], [0, 0, 1, 1], [], []>} : vector<112x256xbf16>, vector<256x128xbf16>, vector<112x128xf32> -> vector<112x128xf32>
    %c0_3 = arith.constant 0 : index
    %c0_4 = arith.constant 0 : index
    %3 = vector.load %arg3[%c0_3, %c0_4] : memref<1x128xf32, #tpu.memory_space<vmem>>, vector<1x128xf32>
    %4 = vector.broadcast %3 : vector<1x128xf32> to vector<112x128xf32>
    %5 = arith.addf %2, %4 : vector<112x128xf32>
    %cst_5 = arith.constant 0.000000e+00 : f32
    %6 = vector.broadcast %cst_5 : f32 to vector<112x128xf32>
    %7 = arith.maximumf %5, %6 : vector<112x128xf32>
    %8 = arith.truncf %7 : vector<112x128xf32> to vector<112x128xbf16>
    %c0_6 = arith.constant 0 : index
    %c0_7 = arith.constant 0 : index
    %9 = vector.load %arg4[%c0_6, %c0_7] : memref<112x128xbf16, #tpu.memory_space<vmem>>, vector<112x128xbf16>
    tpu.vector_store %arg4[%c0_6, %c0_7], %8 {strides = array<i32>} : memref<112x128xbf16, #tpu.memory_space<vmem>>, vector<112x128xbf16>,
    return
  }
  func.func @transform_0(%arg0: i32) -> (i32, i32) {
    %c0_i32 = arith.constant 0 : i32
    %c0_i32_0 = arith.constant 0 : i32
    return %arg0, %c0_i32 : i32, i32
  }
  func.func @transform_1(%arg0: i32) -> (i32, i32) {
    %c0_i32 = arith.constant 0 : i32
    %c0_i32_0 = arith.constant 0 : i32
    %c0_i32_1 = arith.constant 0 : i32
    return %c0_i32, %c0_i32_0 : i32, i32
  }
  func.func @transform_2(%arg0: i32) -> (i32, i32) {
    %c0_i32 = arith.constant 0 : i32
    %c0_i32_0 = arith.constant 0 : i32
    %c0_i32_1 = arith.constant 0 : i32
    return %c0_i32, %c0_i32_0 : i32, i32
  }
  func.func @transform_3(%arg0: i32) -> (i32, i32) {
    %c0_i32 = arith.constant 0 : i32
    %c0_i32_0 = arith.constant 0 : i32
    return %arg0, %c0_i32 : i32, i32
  }
}

module attributes {stable_mosaic.version = 11 : i64} {
  func.func @_gemm_bias_relu_kernel(%arg0: i32, %arg1: memref<16x512xbf16, #tpu.memory_space<vmem>>, %arg2: memref<512x128xbf16, #tpu.memory_space<vmem>>, %arg3: memref<1x128xf32, #tpu.memory_space<vmem>>, %arg4: memref<16x128xbf16, #tpu.memory_space<vmem>>) attributes {dimension_semantics = [#tpu.dimension_semantics<parallel>], iteration_bounds = array<i64: 2>, scalar_prefetch = 0 : i64, scratch_operands = 0 : i64, tpu.core_type = #tpu.core_type<tc>, window_params = [{transform_indices = @transform_0, window_bounds = array<i64: 16, 512>}, {pipeline_mode = #tpu.pipeline_mode<synchronous>, transform_indices = @transform_1, window_bounds = array<i64: 512, 128>}, {pipeline_mode = #tpu.pipeline_mode<synchronous>, transform_indices = @transform_2, window_bounds = array<i64: 1, 128>}, {transform_indices = @transform_3, window_bounds = array<i64: 16, 128>}]} {
    %c0 = arith.constant 0 : index
    %c0_0 = arith.constant 0 : index
    %0 = vector.load %arg1[%c0, %c0_0] : memref<16x512xbf16, #tpu.memory_space<vmem>>, vector<16x512xbf16>
    %c0_1 = arith.constant 0 : index
    %c0_2 = arith.constant 0 : index
    %1 = vector.load %arg2[%c0_1, %c0_2] : memref<512x128xbf16, #tpu.memory_space<vmem>>, vector<512x128xbf16>
    %cst = arith.constant dense<0.000000e+00> : vector<16x128xf32>
    %2 = tpu.matmul %0, %1, %cst {dimension_numbers = #tpu.dot_dimension_numbers<[1], [0], [0], [1], [0, 0, 1, 1], [], []>} : vector<16x512xbf16>, vector<512x128xbf16>, vector<16x128xf32> -> vector<16x128xf32>
    %c0_3 = arith.constant 0 : index
    %c0_4 = arith.constant 0 : index
    %3 = vector.load %arg3[%c0_3, %c0_4] : memref<1x128xf32, #tpu.memory_space<vmem>>, vector<1x128xf32>
    %4 = vector.broadcast %3 : vector<1x128xf32> to vector<16x128xf32>
    %5 = arith.addf %2, %4 : vector<16x128xf32>
    %cst_5 = arith.constant 0.000000e+00 : f32
    %6 = vector.broadcast %cst_5 : f32 to vector<16x128xf32>
    %7 = arith.maximumf %5, %6 : vector<16x128xf32>
    %8 = arith.truncf %7 : vector<16x128xf32> to vector<16x128xbf16>
    %c0_6 = arith.constant 0 : index
    %c0_7 = arith.constant 0 : index
    %9 = vector.load %arg4[%c0_6, %c0_7] : memref<16x128xbf16, #tpu.memory_space<vmem>>, vector<16x128xbf16>
    tpu.vector_store %arg4[%c0_6, %c0_7], %8 {strides = array<i32>} : memref<16x128xbf16, #tpu.memory_space<vmem>>, vector<16x128xbf16>,
    return
  }
  func.func @transform_0(%arg0: i32) -> (i32, i32) {
    %c0_i32 = arith.constant 0 : i32
    %c0_i32_0 = arith.constant 0 : i32
    return %arg0, %c0_i32 : i32, i32
  }
  func.func @transform_1(%arg0: i32) -> (i32, i32) {
    %c0_i32 = arith.constant 0 : i32
    %c0_i32_0 = arith.constant 0 : i32
    %c0_i32_1 = arith.constant 0 : i32
    return %c0_i32, %c0_i32_0 : i32, i32
  }
  func.func @transform_2(%arg0: i32) -> (i32, i32) {
    %c0_i32 = arith.constant 0 : i32
    %c0_i32_0 = arith.constant 0 : i32
    %c0_i32_1 = arith.constant 0 : i32
    return %c0_i32, %c0_i32_0 : i32, i32
  }
  func.func @transform_3(%arg0: i32) -> (i32, i32) {
    %c0_i32 = arith.constant 0 : i32
    %c0_i32_0 = arith.constant 0 : i32
    return %arg0, %c0_i32 : i32, i32
  }
}

module attributes {stable_mosaic.version = 11 : i64} {
  func.func @_gemm_bias_relu_kernel(%arg0: i32, %arg1: memref<16x640xbf16, #tpu.memory_space<vmem>>, %arg2: memref<640x128xbf16, #tpu.memory_space<vmem>>, %arg3: memref<1x128xf32, #tpu.memory_space<vmem>>, %arg4: memref<16x128xf32, #tpu.memory_space<vmem>>) attributes {dimension_semantics = [#tpu.dimension_semantics<parallel>], iteration_bounds = array<i64: 1>, scalar_prefetch = 0 : i64, scratch_operands = 0 : i64, tpu.core_type = #tpu.core_type<tc>, window_params = [{transform_indices = @transform_0, window_bounds = array<i64: 16, 640>}, {pipeline_mode = #tpu.pipeline_mode<synchronous>, transform_indices = @transform_1, window_bounds = array<i64: 640, 128>}, {pipeline_mode = #tpu.pipeline_mode<synchronous>, transform_indices = @transform_2, window_bounds = array<i64: 1, 128>}, {transform_indices = @transform_3, window_bounds = array<i64: 16, 128>}]} {
    %c0 = arith.constant 0 : index
    %c0_0 = arith.constant 0 : index
    %0 = vector.load %arg1[%c0, %c0_0] : memref<16x640xbf16, #tpu.memory_space<vmem>>, vector<16x640xbf16>
    %c0_1 = arith.constant 0 : index
    %c0_2 = arith.constant 0 : index
    %1 = vector.load %arg2[%c0_1, %c0_2] : memref<640x128xbf16, #tpu.memory_space<vmem>>, vector<640x128xbf16>
    %cst = arith.constant dense<0.000000e+00> : vector<16x128xf32>
    %2 = tpu.matmul %0, %1, %cst {dimension_numbers = #tpu.dot_dimension_numbers<[1], [0], [0], [1], [0, 0, 1, 1], [], []>} : vector<16x640xbf16>, vector<640x128xbf16>, vector<16x128xf32> -> vector<16x128xf32>
    %c0_3 = arith.constant 0 : index
    %c0_4 = arith.constant 0 : index
    %3 = vector.load %arg3[%c0_3, %c0_4] : memref<1x128xf32, #tpu.memory_space<vmem>>, vector<1x128xf32>
    %4 = vector.broadcast %3 : vector<1x128xf32> to vector<16x128xf32>
    %5 = arith.addf %2, %4 : vector<16x128xf32>
    %cst_5 = arith.constant 0.000000e+00 : f32
    %6 = vector.broadcast %cst_5 : f32 to vector<16x128xf32>
    %7 = arith.maximumf %5, %6 : vector<16x128xf32>
    %c0_6 = arith.constant 0 : index
    %c0_7 = arith.constant 0 : index
    %8 = vector.load %arg4[%c0_6, %c0_7] : memref<16x128xf32, #tpu.memory_space<vmem>>, vector<16x128xf32>
    tpu.vector_store %arg4[%c0_6, %c0_7], %7 {strides = array<i32>} : memref<16x128xf32, #tpu.memory_space<vmem>>, vector<16x128xf32>,
    return
  }
  func.func @transform_0(%arg0: i32) -> (i32, i32) {
    %c0_i32 = arith.constant 0 : i32
    %c0_i32_0 = arith.constant 0 : i32
    return %arg0, %c0_i32 : i32, i32
  }
  func.func @transform_1(%arg0: i32) -> (i32, i32) {
    %c0_i32 = arith.constant 0 : i32
    %c0_i32_0 = arith.constant 0 : i32
    %c0_i32_1 = arith.constant 0 : i32
    return %c0_i32, %c0_i32_0 : i32, i32
  }
  func.func @transform_2(%arg0: i32) -> (i32, i32) {
    %c0_i32 = arith.constant 0 : i32
    %c0_i32_0 = arith.constant 0 : i32
    %c0_i32_1 = arith.constant 0 : i32
    return %c0_i32, %c0_i32_0 : i32, i32
  }
  func.func @transform_3(%arg0: i32) -> (i32, i32) {
    %c0_i32 = arith.constant 0 : i32
    %c0_i32_0 = arith.constant 0 : i32
    return %arg0, %c0_i32 : i32, i32
  }
}

</mosaic_0001>

<bundles_post_ra>
// kernel: full_cnn_forward.3
= control target key start
LH: loop header
LB: loop body
LE: loop exit
PB: predicated region body
PF: predicated region fallthrough
CT: control target
= control target key end

     0   :  { %s834_s12 = smov 0   ;;  %s961_s0 = inlined_call_operand.vmem [shape: bf16[224,256], index: 0, kind: input, shape index: {}]   ;;  %s962_s1 = inlined_call_operand.vmem [shape: bf16[256,128], index: 1, kind: input, shape index: {}]   ;;  %s963_s2 = inlined_call_operand.vmem [shape: f32[1,128], index: 2, kind: input, shape index: {}]   ;;  %s964_s3 = inlined_call_operand.vmem [shape: bf16[224,128], index: 3, kind: output, shape index: {}]  }
   0x1 LB: > { %s579_s13 = sadd.s32 4294967295, %s812_s12   ;;  %p583_p0 = scmp.ge.s32.totalorder %s812_s12, 1  ;;  %s812_s12 = sphi %s834_s12, %s13_s12  }
   0x2   : > { %p139_p1 = scmp.lt.s32.totalorder %s812_s12, 3 }
   0x4   : > { %p140_p2 = pnand %p583_p0, %p139_p1 }
   0x5   : > { %s164_s26 = smul.u32 (!%p140_p2), 14, %s579_s13 }
   0x6   : > { %143 = sbr.rel (%p140_p2) target bundleno = 240 (0xf0), region = 32 }
   0x7   : > { %p165_p3 = scmp.lt.s32.totalorder (!%p140_p2), %s164_s26, 27 }
   0xb   : > { %v731_v0 = vld [vmem:[%s962_s1 + $0x38] sm:$0xff]  ;;  %v730_v2 = vld [vmem:[%s962_s1 + $0x30] sm:$0xff]  ;;  %v729_v4 = vld [vmem:[%s962_s1 + $0x28] sm:$0xff]  ;;  %s966_s26 = smov (!%p165_p3, %s164_s26), 27 }
   0xc   : > { %v739_v1 = vld [vmem:[%s962_s1 + $0x78] sm:$0xff]  ;;  %393 = vmatpush.bf16.msra.mxu0 %v731_v0  ;;  %781 = vmatpush.bf16.msra.mxu2 %v731_v0  ;;  %v738_v3 = vld [vmem:[%s962_s1 + $0x70] sm:$0xff]  ;;  %v737_v5 = vld [vmem:[%s962_s1 + $0x68] sm:$0xff]  ;;  %s709_s13 = sshll.u32 %s966_s26, 3  ;;  %s586_s28 = sshll.u32 %s966_s26, 2 }
   0xd   : > { %437 = vmatpush.bf16.msra.mxu1 %v739_v1  ;;  %789 = vmatpush.bf16.msra.mxu3 %v739_v1  ;;  %v728_v6 = vld [vmem:[%s962_s1 + $0x20] sm:$0xff]  ;;  %v727_v8 = vld [vmem:[%s962_s1 + $0x18] sm:$0xff]  ;;  %v726_v10 = vld [vmem:[%s962_s1 + $0x10] sm:$0xff]  ;;  %s887_s18 = scalar_lea.vmem %s961_s0, %s709_s13  ;;  %s937_s4 = scalar_lea.vmem %s964_s3, %s586_s28 }
   0xe   : > { %v736_v7 = vld [vmem:[%s962_s1 + $0x60] sm:$0xff]  ;;  %v735_v9 = vld [vmem:[%s962_s1 + $0x58] sm:$0xff]  ;;  %v734_v11 = vld [vmem:[%s962_s1 + $0x50] sm:$0xff] }
   0xf   : > { %v725_v12 = vld [vmem:[%s962_s1 + $0x8] sm:$0xff]  ;;  %v724_v14 = vld [vmem:[%s962_s1] sm:$0xff]  ;;  %v613_v18 = vld [vmem:[%s887_s18 + $0x30] sm:$0xf] }
  0x10   : > { %394 = vmatpush.bf16.msra.mxu0 %v730_v2  ;;  %782 = vmatpush.bf16.msra.mxu2 %v730_v2  ;;  %v733_v13 = vld [vmem:[%s962_s1 + $0x48] sm:$0xff]  ;;  %v732_v15 = vld [vmem:[%s962_s1 + $0x40] sm:$0xff]  ;;  %v717_v19 = vld [vmem:[%s887_s18 + $0x34] sm:$0xf0] }
  0x11   : > { %438 = vmatpush.bf16.msra.mxu1 %v738_v3  ;;  %790 = vmatpush.bf16.msra.mxu3 %v738_v3  ;;  %v589_v16 = vld [vmem:[%s887_s18] sm:$0xf]  ;;  %v711_v17 = vld [vmem:[%s887_s18 + $0x4] sm:$0xf0]  ;;  %v710_v20 = vld [vmem:[%s887_s18 + $0x4] sm:$0xf]  ;;  %v614_v25 = vor.u32 %v717_v19, %v613_v18 }
  0x12   : > { %v591_v21 = vld [vmem:[%s887_s18 + $0x8] sm:$0xf0]  ;;  %v718_v22 = vld [vmem:[%s887_s18 + $0x44] sm:$0xf]  ;;  %v590_v24 = vor.u32 %v711_v17, %v589_v16  ;;  %v597_v28 = vld [vmem:[%s887_s18 + $0x10] sm:$0xf] }
  0x13   : > { %v623_v23 = vld [vmem:[%s887_s18 + $0x48] sm:$0xf0]  ;;  %v594_v26 = vor.u32 %v710_v20, %v591_v21  ;;  %v713_v29 = vld [vmem:[%s887_s18 + $0x14] sm:$0xf0]  ;;  %v621_v30 = vld [vmem:[%s887_s18 + $0x40] sm:$0xf] }
  0x14   : > { %395 = vmatpush.bf16.msra.mxu0 %v729_v4  ;;  %783 = vmatpush.bf16.msra.mxu2 %v729_v4  ;;  %v626_v27 = vor.u32 %v718_v22, %v623_v23  ;;  %v719_v31 = vld [vmem:[%s887_s18 + $0x44] sm:$0xf0]  ;;  %v712_v32 = vld [vmem:[%s887_s18 + $0x14] sm:$0xf]  ;;  %v599_v33 = vld [vmem:[%s887_s18 + $0x18] sm:$0xf0]  ;;  %v598_v36 = vor.u32 %v713_v29, %v597_v28 }
  0x15   : > { %439 = vmatpush.bf16.msra.mxu1 %v737_v5  ;;  %791 = vmatpush.bf16.msra.mxu3 %v737_v5  ;;  %v720_v34 = vld [vmem:[%s887_s18 + $0x54] sm:$0xf]  ;;  %v631_v35 = vld [vmem:[%s887_s18 + $0x58] sm:$0xf0]  ;;  %v622_v37 = vor.u32 %v719_v31, %v621_v30  ;;  %v602_v38 = vor.u32 %v712_v32, %v599_v33  ;;  %v605_v40 = vld [vmem:[%s887_s18 + $0x20] sm:$0xf] }
  0x16   : > { %v634_v39 = vor.u32 %v720_v34, %v631_v35  ;;  %v715_v41 = vld [vmem:[%s887_s18 + $0x24] sm:$0xf0]  ;;  %v629_v42 = vld [vmem:[%s887_s18 + $0x50] sm:$0xf]  ;;  %v721_v43 = vld [vmem:[%s887_s18 + $0x54] sm:$0xf0] }
  0x17   : > { %v714_v44 = vld [vmem:[%s887_s18 + $0x24] sm:$0xf]  ;;  %v607_v45 = vld [vmem:[%s887_s18 + $0x28] sm:$0xf0]  ;;  %v606_v48 = vor.u32 %v715_v41, %v605_v40  ;;  %v630_v49 = vor.u32 %v721_v43, %v629_v42  ;;  %v637_v52 = vld [vmem:[%s887_s18 + $0x60] sm:$0xf] }
  0x18   : > { %396 = vmatpush.bf16.msra.mxu0 %v728_v6  ;;  %784 = vmatpush.bf16.msra.mxu2 %v728_v6  ;;  %v722_v46 = vld [vmem:[%s887_s18 + $0x64] sm:$0xf]  ;;  %v639_v47 = vld [vmem:[%s887_s18 + $0x68] sm:$0xf0]  ;;  %v610_v50 = vor.u32 %v714_v44, %v607_v45  ;;  %v723_v53 = vld [vmem:[%s887_s18 + $0x64] sm:$0xf0] }
  0x19   : > { %440 = vmatpush.bf16.msra.mxu1 %v736_v7  ;;  %792 = vmatpush.bf16.msra.mxu3 %v736_v7  ;;  %v642_v51 = vor.u32 %v722_v46, %v639_v47  ;;  %v716_v54 = vld [vmem:[%s887_s18 + $0x34] sm:$0xf]  ;;  %v615_v55 = vld [vmem:[%s887_s18 + $0x38] sm:$0xf0]  ;;  %v638_v56 = vor.u32 %v723_v53, %v637_v52  ;;  %v929_v59 = vld [vmem:[%s963_s2] ss:$0 sm:$0xff] }
  0x1a   : > { %v618_v57 = vor.u32 %v716_v54, %v615_v55 }
  0x1c   : > { %397 = vmatpush.bf16.msra.mxu0 %v727_v8  ;;  %785 = vmatpush.bf16.msra.mxu2 %v727_v8 }
  0x1d   : > { %441 = vmatpush.bf16.msra.mxu1 %v735_v9  ;;  %793 = vmatpush.bf16.msra.mxu3 %v735_v9 }
  0x20   : > { %398 = vmatpush.bf16.msra.mxu0 %v726_v10  ;;  %786 = vmatpush.bf16.msra.mxu2 %v726_v10 }
  0x21   : > { %442 = vmatpush.bf16.msra.mxu1 %v734_v11  ;;  %794 = vmatpush.bf16.msra.mxu3 %v734_v11 }
  0x24   : > { %399 = vmatpush.bf16.msra.mxu0 %v725_v12  ;;  %787 = vmatpush.bf16.msra.mxu2 %v725_v12 }
  0x25   : > { %443 = vmatpush.bf16.msra.mxu1 %v733_v13  ;;  %795 = vmatpush.bf16.msra.mxu3 %v733_v13 }
  0x28   : > { %400 = vmatpush.bf16.msra.mxu0 %v724_v14  ;;  %788 = vmatpush.bf16.msra.mxu2 %v724_v14 }
  0x29   : > { %444 = vmatpush.bf16.msra.mxu1 %v732_v15  ;;  %796 = vmatpush.bf16.msra.mxu3 %v732_v15 }
  0x2b   : > { %401 = vmatmul.bf16.vlgmr.msra.gmra.mxu0 %v590_v24  ;;  %416 = vmatmul.bf16.vlgmr.msra.gmra.mxu2 %v614_v25 }
  0x2c   : > { %445 = vmatmul.bf16.vlgmr.msra.gmra.mxu1 %v594_v26  ;;  %465 = vmatmul.bf16.vlgmr.msra.gmra.mxu3 %v626_v27 }
  0x3b   : > { %406 = vmatmul.bf16.gmra.mxu0 %v598_v36  ;;  %421 = vmatmul.bf16.gmra.mxu2 %v622_v37 }
  0x3c   : > { %450 = vmatmul.bf16.gmra.mxu1 %v602_v38  ;;  %470 = vmatmul.bf16.gmra.mxu3 %v634_v39 }
  0x4b   : > { %411 = vmatmul.bf16.gmra.mxu0 %v606_v48  ;;  %426 = vmatmul.bf16.gmra.mxu2 %v630_v49 }
  0x4c   : > { %455 = vmatmul.bf16.gmra.mxu1 %v610_v50  ;;  %475 = vmatmul.bf16.gmra.mxu3 %v642_v51 }
  0x5b   : > { %431 = vmatmul.bf16.gmra.mxu2 %v638_v56 }
  0x5c   : > { %460 = vmatmul.bf16.gmra.mxu1 %v618_v57 }
  0xa8   : > { %v402_v58 = vpop.f32.mrf.mxu0 }
  0xa9   : > { %v446_v60 = vpop.f32.mrf.mxu1  ;;  %v403_v61 = vadd.f32 %v929_v59, %v402_v58 }
  0xab   : > { %v447_v0 = vadd.f32 %v446_v60, %v403_v61 }
  0xad   : > { %v481_v4 = vmax.f32 %v447_v0, 0.0 }
  0xae   : > { %v417_v62 = vpop.f32.mrf.mxu2 }
  0xaf   : > { %v466_v7 = vpop.f32.mrf.mxu3  ;;  %v418_v53 = vadd.f32 %v929_v59, %v417_v62 }
  0xb0   : > { %v404_v63 = vpop.f32.mrf.mxu0 }
  0xb1   : > { %v405_v1 = vadd.f32 %v929_v59, %v404_v63  ;;  %v448_v2 = vpop.f32.mrf.mxu1 }
  0xb3   : > { %v449_v3 = vadd.f32 %v448_v2, %v405_v1 }
  0xb5   : > { %v482_v5 = vmax.f32 %v449_v3, 0.0 }
  0xb6   : > { %v419_v6 = vpop.f32.mrf.mxu2 }
  0xb7   : > { %v743_v8 = vpack.c.bf16 %v482_v5, %v481_v4  ;;  %v468_v14 = vpop.f32.mrf.mxu3  ;;  %v420_v56 = vadd.f32 %v929_v59, %v419_v6 }
  0xb8   : > { %v407_v9 = vpop.f32.mrf.mxu0 }
  0xb9   : > { %744 = vst [vmem:[%s937_s4] sm:$0xff] %v743_v8   ;;  %v451_v10 = vpop.f32.mrf.mxu1  ;;  %v408_v11 = vadd.f32 %v929_v59, %v407_v9 }
  0xbb   : > { %v452_v15 = vadd.f32 %v451_v10, %v408_v11 }
  0xbd   : > { %v483_v20 = vmax.f32 %v452_v15, 0.0 }
  0xbe   : > { %v422_v12 = vpop.f32.mrf.mxu2 }
  0xbf   : > { %v423_v18 = vadd.f32 %v929_v59, %v422_v12  ;;  %v471_v29 = vpop.f32.mrf.mxu3 }
  0xc0   : > { %v409_v13 = vpop.f32.mrf.mxu0 }
  0xc1   : > { %v410_v16 = vadd.f32 %v929_v59, %v409_v13  ;;  %v453_v17 = vpop.f32.mrf.mxu1  ;;  %v467_v23 = vadd.f32 %v466_v7, %v423_v18 }
  0xc3   : > { %v454_v19 = vadd.f32 %v453_v17, %v410_v16  ;;  %v489_v30 = vmax.f32 %v467_v23, 0.0 }
  0xc5   : > { %v484_v21 = vmax.f32 %v454_v19, 0.0 }
  0xc6   : > { %v424_v22 = vpop.f32.mrf.mxu2 }
  0xc7   : > { %v748_v24 = vpack.c.bf16 %v484_v21, %v483_v20  ;;  %v425_v25 = vadd.f32 %v929_v59, %v424_v22  ;;  %v473_v41 = vpop.f32.mrf.mxu3 }
  0xc8   : > { %v412_v26 = vpop.f32.mrf.mxu0 }
  0xc9   : > { %775 = vst [vmem:[%s937_s4 + $0x8] sm:$0xff] %v748_v24   ;;  %v469_v27 = vadd.f32 %v468_v14, %v425_v25  ;;  %v456_v28 = vpop.f32.mrf.mxu1  ;;  %v413_v33 = vadd.f32 %v929_v59, %v412_v26 }
  0xcb   : > { %v490_v31 = vmax.f32 %v469_v27, 0.0  ;;  %v457_v36 = vadd.f32 %v456_v28, %v413_v33 }
  0xcd   : > { %v763_v32 = vpack.c.bf16 %v490_v31, %v489_v30  ;;  %v485_v42 = vmax.f32 %v457_v36, 0.0 }
  0xce   : > { %v427_v34 = vpop.f32.mrf.mxu2 }
  0xcf   : > { %778 = vst [vmem:[%s937_s4 + $0x20] sm:$0xff] %v763_v32   ;;  %v428_v39 = vadd.f32 %v929_v59, %v427_v34  ;;  %v476_v54 = vpop.f32.mrf.mxu3 }
  0xd0   : > { %v414_v35 = vpop.f32.mrf.mxu0 }
  0xd1   : > { %v415_v37 = vadd.f32 %v929_v59, %v414_v35  ;;  %v458_v38 = vpop.f32.mrf.mxu1  ;;  %v472_v45 = vadd.f32 %v471_v29, %v428_v39 }
  0xd3   : > { %v459_v40 = vadd.f32 %v458_v38, %v415_v37  ;;  %v491_v50 = vmax.f32 %v472_v45, 0.0 }
  0xd5   : > { %v486_v43 = vmax.f32 %v459_v40, 0.0 }
  0xd6   : > { %v429_v44 = vpop.f32.mrf.mxu2 }
  0xd7   : > { %v753_v46 = vpack.c.bf16 %v486_v43, %v485_v42  ;;  %v430_v47 = vadd.f32 %v929_v59, %v429_v44  ;;  %v478_v62 = vpop.f32.mrf.mxu3 }
  0xd9   : > { %776 = vst [vmem:[%s937_s4 + $0x10] sm:$0xff] %v753_v46   ;;  %v474_v48 = vadd.f32 %v473_v41, %v430_v47  ;;  %v461_v49 = vpop.f32.mrf.mxu1 }
  0xda   : > { %v462_v57 = vadd.f32 %v461_v49, %v418_v53 }
  0xdb   : > { %v492_v51 = vmax.f32 %v474_v48, 0.0 }
  0xdc   : > { %v487_v63 = vmax.f32 %v462_v57, 0.0 }
  0xdd   : > { %v768_v52 = vpack.c.bf16 %v492_v51, %v491_v50 }
  0xde   : > { %v432_v55 = vpop.f32.mrf.mxu2 }
  0xdf   : > { %779 = vst [vmem:[%s937_s4 + $0x28] sm:$0xff] %v768_v52   ;;  %v433_v61 = vadd.f32 %v929_v59, %v432_v55 }
  0xe1   : > { %v463_v58 = vpop.f32.mrf.mxu1  ;;  %v477_v3 = vadd.f32 %v476_v54, %v433_v61 }
  0xe2   : > { %v464_v60 = vadd.f32 %v463_v58, %v420_v56 }
  0xe3   : > { %v493_v7 = vmax.f32 %v477_v3, 0.0 }
  0xe4   : > { %v488_v0 = vmax.f32 %v464_v60, 0.0 }
  0xe6   : > { %v758_v1 = vpack.c.bf16 %v488_v0, %v487_v63  ;;  %v434_v2 = vpop.f32.mrf.mxu2 }
  0xe7   : > { %v435_v4 = vadd.f32 %v929_v59, %v434_v2 }
  0xe8   : > { %777 = vst [vmem:[%s937_s4 + $0x18] sm:$0xff] %v758_v1  }
  0xe9   : > { %v479_v5 = vadd.f32 %v478_v62, %v435_v4 }
  0xeb   : > { %v494_v8 = vmax.f32 %v479_v5, 0.0 }
  0xed   : > { %v773_v9 = vpack.c.bf16 %v494_v8, %v493_v7 }
  0xef   : > { %780 = vst [vmem:[%s937_s4 + $0x30] sm:$0xff] %v773_v9  }
  0xf0 PF: > { %s13_s12 = sadd.s32 1, %s812_s12  }
  0xf1   : > { %p10_p4 = scmp.ge.s32.totalorder %s13_s12, 4  }
  0xf3   :  { %12 = sbr.rel (!%p10_p4) target bundleno = 1 (0x1), region = 62 }

// kernel: full_cnn_forward.4
= control target key start
LH: loop header
LB: loop body
LE: loop exit
PB: predicated region body
PF: predicated region fallthrough
CT: control target
= control target key end

     0   :  { %s814_s12 = smov 0   ;;  %s934_s0 = inlined_call_operand.vmem [shape: bf16[32,512], index: 0, kind: input, shape index: {}]   ;;  %s935_s1 = inlined_call_operand.vmem [shape: bf16[512,128], index: 1, kind: input, shape index: {}]   ;;  %s936_s2 = inlined_call_operand.vmem [shape: f32[1,128], index: 2, kind: input, shape index: {}]   ;;  %s937_s3 = inlined_call_operand.vmem [shape: bf16[32,128], index: 3, kind: output, shape index: {}]  }
   0x1 LB: > { %s579_s13 = sadd.s32 4294967295, %s792_s12   ;;  %p583_p0 = scmp.ge.s32.totalorder %s792_s12, 1  ;;  %s792_s12 = sphi %s814_s12, %s13_s12  }
   0x2   : > { %p139_p1 = scmp.lt.s32.totalorder %s792_s12, 3 }
   0x4   : > { %p140_p2 = pnand %p583_p0, %p139_p1 }
   0x5   : > { %s584_s11 = sshll.u32 (!%p140_p2), %s579_s13, 1 }
   0x6   : > { %143 = sbr.rel (%p140_p2) target bundleno = 194 (0xc2), region = 32  ;;  %p165_p3 = scmp.lt.s32.totalorder (!%p140_p2), %s584_s11, 3 }
   0xb   : > { %v747_v0 = vld [vmem:[%s935_s1 + $0x38] sm:$0xff]  ;;  %v746_v4 = vld [vmem:[%s935_s1 + $0x30] sm:$0xff]  ;;  %v745_v8 = vld [vmem:[%s935_s1 + $0x28] sm:$0xff]  ;;  %s939_s11 = smov (!%p165_p3, %s584_s11), 3 }
   0xc   : > { %v755_v1 = vld [vmem:[%s935_s1 + $0x78] sm:$0xff]  ;;  %461 = vmatpush.bf16.msra.mxu0 %v747_v0  ;;  %v754_v5 = vld [vmem:[%s935_s1 + $0x70] sm:$0xff]  ;;  %v753_v9 = vld [vmem:[%s935_s1 + $0x68] sm:$0xff]  ;;  %s735_s10 = sshll.u32 %s939_s11, 4  ;;  %s588_s7 = sshll.u32 %s939_s11, 2 }
   0xd   : > { %v763_v2 = vld [vmem:[%s935_s1 + $0xb8] sm:$0xff]  ;;  %475 = vmatpush.bf16.msra.mxu1 %v755_v1  ;;  %v762_v6 = vld [vmem:[%s935_s1 + $0xb0] sm:$0xff]  ;;  %v761_v10 = vld [vmem:[%s935_s1 + $0xa8] sm:$0xff]  ;;  %s169_s20 = scalar_lea.vmem %s934_s0, %s735_s10  ;;  %s175_s10 = scalar_lea.vmem %s937_s3, %s588_s7 }
   0xe   : > { %v771_v3 = vld [vmem:[%s935_s1 + $0xf8] sm:$0xff]  ;;  %489 = vmatpush.bf16.msra.mxu2 %v763_v2  ;;  %v770_v7 = vld [vmem:[%s935_s1 + $0xf0] sm:$0xff]  ;;  %v769_v11 = vld [vmem:[%s935_s1 + $0xe8] sm:$0xff] }
   0xf   : > { %503 = vmatpush.bf16.msra.mxu3 %v771_v3  ;;  %v744_v12 = vld [vmem:[%s935_s1 + $0x20] sm:$0xff]  ;;  %v743_v16 = vld [vmem:[%s935_s1 + $0x18] sm:$0xff]  ;;  %v742_v20 = vld [vmem:[%s935_s1 + $0x10] sm:$0xff] }
  0x10   : > { %462 = vmatpush.bf16.msra.mxu0 %v746_v4  ;;  %v752_v13 = vld [vmem:[%s935_s1 + $0x60] sm:$0xff]  ;;  %v751_v17 = vld [vmem:[%s935_s1 + $0x58] sm:$0xff]  ;;  %v750_v21 = vld [vmem:[%s935_s1 + $0x50] sm:$0xff] }
  0x11   : > { %476 = vmatpush.bf16.msra.mxu1 %v754_v5  ;;  %v760_v14 = vld [vmem:[%s935_s1 + $0xa0] sm:$0xff]  ;;  %v759_v18 = vld [vmem:[%s935_s1 + $0x98] sm:$0xff]  ;;  %v758_v22 = vld [vmem:[%s935_s1 + $0x90] sm:$0xff] }
  0x12   : > { %490 = vmatpush.bf16.msra.mxu2 %v762_v6  ;;  %v768_v15 = vld [vmem:[%s935_s1 + $0xe0] sm:$0xff]  ;;  %v767_v19 = vld [vmem:[%s935_s1 + $0xd8] sm:$0xff]  ;;  %v766_v23 = vld [vmem:[%s935_s1 + $0xd0] sm:$0xff] }
  0x13   : > { %504 = vmatpush.bf16.msra.mxu3 %v770_v7  ;;  %v741_v24 = vld [vmem:[%s935_s1 + $0x8] sm:$0xff]  ;;  %v740_v28 = vld [vmem:[%s935_s1] sm:$0xff]  ;;  %v738_v33 = vld [vmem:[%s169_s20 + $0xc] sm:$0xf0] }
  0x14   : > { %463 = vmatpush.bf16.msra.mxu0 %v745_v8  ;;  %v749_v25 = vld [vmem:[%s935_s1 + $0x48] sm:$0xff]  ;;  %v748_v29 = vld [vmem:[%s935_s1 + $0x40] sm:$0xff]  ;;  %v593_v35 = vld [vmem:[%s169_s20 + $0x10] sm:$0xf0] }
  0x15   : > { %477 = vmatpush.bf16.msra.mxu1 %v753_v9  ;;  %v757_v26 = vld [vmem:[%s935_s1 + $0x88] sm:$0xff]  ;;  %v756_v30 = vld [vmem:[%s935_s1 + $0x80] sm:$0xff]  ;;  %v739_v37 = vld [vmem:[%s169_s20 + $0x14] sm:$0xf0] }
  0x16   : > { %491 = vmatpush.bf16.msra.mxu2 %v761_v10  ;;  %v765_v27 = vld [vmem:[%s935_s1 + $0xc8] sm:$0xff]  ;;  %v764_v31 = vld [vmem:[%s935_s1 + $0xc0] sm:$0xff]  ;;  %v601_v39 = vld [vmem:[%s169_s20 + $0x18] sm:$0xf0] }
  0x17   : > { %505 = vmatpush.bf16.msra.mxu3 %v769_v11  ;;  %v591_v32 = vld [vmem:[%s169_s20] sm:$0xf]  ;;  %v736_v34 = vld [vmem:[%s169_s20 + $0x4] sm:$0xf]  ;;  %v599_v36 = vld [vmem:[%s169_s20 + $0x8] sm:$0xf] }
  0x18   : > { %464 = vmatpush.bf16.msra.mxu0 %v744_v12  ;;  %v737_v38 = vld [vmem:[%s169_s20 + $0xc] sm:$0xf]  ;;  %v592_v40 = vor.u32 %v738_v33, %v591_v32  ;;  %v596_v41 = vor.u32 %v736_v34, %v593_v35  ;;  %v600_v42 = vor.u32 %v739_v37, %v599_v36  ;;  %v785_v44 = vld [vmem:[%s936_s2] ss:$0 sm:$0xff] }
  0x19   : > { %478 = vmatpush.bf16.msra.mxu1 %v752_v13  ;;  %v604_v43 = vor.u32 %v737_v38, %v601_v39 }
  0x1a   : > { %492 = vmatpush.bf16.msra.mxu2 %v760_v14 }
  0x1b   : > { %506 = vmatpush.bf16.msra.mxu3 %v768_v15 }
  0x1c   : > { %465 = vmatpush.bf16.msra.mxu0 %v743_v16 }
  0x1d   : > { %479 = vmatpush.bf16.msra.mxu1 %v751_v17 }
  0x1e   : > { %493 = vmatpush.bf16.msra.mxu2 %v759_v18 }
  0x1f   : > { %507 = vmatpush.bf16.msra.mxu3 %v767_v19 }
  0x20   : > { %466 = vmatpush.bf16.msra.mxu0 %v742_v20 }
  0x21   : > { %480 = vmatpush.bf16.msra.mxu1 %v750_v21 }
  0x22   : > { %494 = vmatpush.bf16.msra.mxu2 %v758_v22 }
  0x23   : > { %508 = vmatpush.bf16.msra.mxu3 %v766_v23 }
  0x24   : > { %467 = vmatpush.bf16.msra.mxu0 %v741_v24 }
  0x25   : > { %481 = vmatpush.bf16.msra.mxu1 %v749_v25 }
  0x26   : > { %495 = vmatpush.bf16.msra.mxu2 %v757_v26 }
  0x27   : > { %509 = vmatpush.bf16.msra.mxu3 %v765_v27 }
  0x28   : > { %468 = vmatpush.bf16.msra.mxu0 %v740_v28 }
  0x29   : > { %482 = vmatpush.bf16.msra.mxu1 %v748_v29 }
  0x2a   : > { %496 = vmatpush.bf16.msra.mxu2 %v756_v30 }
  0x2b   : > { %510 = vmatpush.bf16.msra.mxu3 %v764_v31  ;;  %469 = vmatmul.bf16.vlgmr.msra.gmra.mxu0 %v592_v40 }
  0x2c   : > { %483 = vmatmul.bf16.vlgmr.msra.gmra.mxu1 %v596_v41 }
  0x2d   : > { %497 = vmatmul.bf16.vlgmr.msra.gmra.mxu2 %v600_v42 }
  0x2e   : > { %511 = vmatmul.bf16.vlgmr.msra.gmra.mxu3 %v604_v43 }
  0xa8   : > { %v470_v45 = vpop.f32.mrf.mxu0 }
  0xa9   : > { %v484_v46 = vpop.f32.mrf.mxu1  ;;  %v471_v47 = vadd.f32 %v785_v44, %v470_v45 }
  0xab   : > { %v485_v50 = vadd.f32 %v484_v46, %v471_v47 }
  0xb0   : > { %v498_v48 = vpop.f32.mrf.mxu2  ;;  %v472_v51 = vpop.f32.mrf.mxu0 }
  0xb1   : > { %v512_v49 = vpop.f32.mrf.mxu3  ;;  %v473_v52 = vadd.f32 %v785_v44, %v472_v51  ;;  %v499_v53 = vadd.f32 %v498_v48, %v485_v50  ;;  %v486_v54 = vpop.f32.mrf.mxu1 }
  0xb3   : > { %v487_v55 = vadd.f32 %v486_v54, %v473_v52  ;;  %v513_v57 = vadd.f32 %v512_v49, %v499_v53 }
  0xb5   : > { %v517_v61 = vmax.f32 %v513_v57, 0.0 }
  0xb8   : > { %v500_v56 = vpop.f32.mrf.mxu2 }
  0xb9   : > { %v501_v58 = vadd.f32 %v500_v56, %v487_v55  ;;  %v514_v59 = vpop.f32.mrf.mxu3 }
  0xbb   : > { %v515_v60 = vadd.f32 %v514_v59, %v501_v58 }
  0xbd   : > { %v518_v62 = vmax.f32 %v515_v60, 0.0 }
  0xbf   : > { %v775_v63 = vpack.c.bf16 %v518_v62, %v517_v61 }
  0xc1   : > { %776 = vst [vmem:[%s175_s10] sm:$0xff] %v775_v63  }
  0xc2 PF: > { %s13_s12 = sadd.s32 1, %s792_s12  }
  0xc3   : > { %p10_p4 = scmp.ge.s32.totalorder %s13_s12, 4  }
  0xc5   :  { %12 = sbr.rel (!%p10_p4) target bundleno = 1 (0x1), region = 62 }

// kernel: full_cnn_forward.5
= control target key start
LH: loop header
LB: loop body
LE: loop exit
PB: predicated region body
PF: predicated region fallthrough
CT: control target
= control target key end

     0   :  { %s853_s1 = inlined_call_operand.vmem [shape: bf16[640,128], index: 1, kind: input, shape index: {}]   ;;  %s854_s2 = inlined_call_operand.vmem [shape: f32[1,128], index: 2, kind: input, shape index: {}]   ;;  %s855_s0 = inlined_call_operand.vmem [shape: bf16[16,640], index: 0, kind: input, shape index: {}]   ;;  %s856_s3 = inlined_call_operand.vmem [shape: f32[16,128], index: 3, kind: output, shape index: {}]  }
   0x1   :  { %v640_v0 = vld [vmem:[%s853_s1 + $0x38] sm:$0xff]  ;;  %v639_v4 = vld [vmem:[%s853_s1 + $0x30] sm:$0xff]  ;;  %v638_v8 = vld [vmem:[%s853_s1 + $0x28] sm:$0xff] }
   0x2   :  { %v656_v1 = vld [vmem:[%s853_s1 + $0xb8] sm:$0xff]  ;;  %370 = vmatpush.bf16.msra.mxu0 %v640_v0  ;;  %v655_v5 = vld [vmem:[%s853_s1 + $0xb0] sm:$0xff]  ;;  %v654_v9 = vld [vmem:[%s853_s1 + $0xa8] sm:$0xff] }
   0x3   :  { %v664_v2 = vld [vmem:[%s853_s1 + $0xf8] sm:$0xff]  ;;  %398 = vmatpush.bf16.msra.mxu2 %v656_v1  ;;  %v663_v6 = vld [vmem:[%s853_s1 + $0xf0] sm:$0xff]  ;;  %v662_v10 = vld [vmem:[%s853_s1 + $0xe8] sm:$0xff] }
   0x4   :  { %v648_v3 = vld [vmem:[%s853_s1 + $0x78] sm:$0xff]  ;;  %412 = vmatpush.bf16.msra.mxu3 %v664_v2  ;;  %v647_v7 = vld [vmem:[%s853_s1 + $0x70] sm:$0xff]  ;;  %v646_v11 = vld [vmem:[%s853_s1 + $0x68] sm:$0xff] }
   0x5   :  { %384 = vmatpush.bf16.msra.mxu1 %v648_v3  ;;  %v637_v12 = vld [vmem:[%s853_s1 + $0x20] sm:$0xff]  ;;  %v636_v16 = vld [vmem:[%s853_s1 + $0x18] sm:$0xff]  ;;  %v635_v20 = vld [vmem:[%s853_s1 + $0x10] sm:$0xff] }
   0x6   :  { %371 = vmatpush.bf16.msra.mxu0 %v639_v4  ;;  %v653_v13 = vld [vmem:[%s853_s1 + $0xa0] sm:$0xff]  ;;  %v652_v17 = vld [vmem:[%s853_s1 + $0x98] sm:$0xff]  ;;  %v651_v21 = vld [vmem:[%s853_s1 + $0x90] sm:$0xff] }
   0x7   :  { %399 = vmatpush.bf16.msra.mxu2 %v655_v5  ;;  %v661_v14 = vld [vmem:[%s853_s1 + $0xe0] sm:$0xff]  ;;  %v660_v18 = vld [vmem:[%s853_s1 + $0xd8] sm:$0xff]  ;;  %v659_v22 = vld [vmem:[%s853_s1 + $0xd0] sm:$0xff] }
   0x8   :  { %413 = vmatpush.bf16.msra.mxu3 %v663_v6  ;;  %v645_v15 = vld [vmem:[%s853_s1 + $0x60] sm:$0xff]  ;;  %v644_v19 = vld [vmem:[%s853_s1 + $0x58] sm:$0xff]  ;;  %v643_v23 = vld [vmem:[%s853_s1 + $0x50] sm:$0xff] }
   0x9   :  { %385 = vmatpush.bf16.msra.mxu1 %v647_v7  ;;  %v634_v24 = vld [vmem:[%s853_s1 + $0x8] sm:$0xff]  ;;  %v633_v28 = vld [vmem:[%s853_s1] sm:$0xff]  ;;  %v672_v29 = vld [vmem:[%s853_s1 + $0x138] sm:$0xff] }
   0xa   :  { %372 = vmatpush.bf16.msra.mxu0 %v638_v8  ;;  %v650_v25 = vld [vmem:[%s853_s1 + $0x88] sm:$0xff]  ;;  %v649_v30 = vld [vmem:[%s853_s1 + $0x80] sm:$0xff]  ;;  %v631_v32 = vld [vmem:[%s855_s0 + $0x18] sm:$0xf0] }
   0xb   :  { %400 = vmatpush.bf16.msra.mxu2 %v654_v9  ;;  %v658_v26 = vld [vmem:[%s853_s1 + $0xc8] sm:$0xff]  ;;  %v450_v33 = vld [vmem:[%s855_s0] sm:$0xf]  ;;  %v630_v34 = vld [vmem:[%s855_s0 + $0x10] sm:$0xf0] }
   0xc   :  { %414 = vmatpush.bf16.msra.mxu3 %v662_v10  ;;  %v642_v27 = vld [vmem:[%s853_s1 + $0x48] sm:$0xff]  ;;  %v657_v35 = vld [vmem:[%s853_s1 + $0xc0] sm:$0xff]  ;;  %v452_v40 = vld [vmem:[%s855_s0 + $0x14] sm:$0xf0]  ;;  %v451_v42 = vor.u32 %v630_v34, %v450_v33 }
   0xd   :  { %386 = vmatpush.bf16.msra.mxu1 %v646_v11  ;;  %v458_v31 = vld [vmem:[%s855_s0 + $0x8] sm:$0xf]  ;;  %v629_v36 = vld [vmem:[%s855_s0 + $0xc] sm:$0xf]  ;;  %v460_v37 = vld [vmem:[%s855_s0 + $0x1c] sm:$0xf0] }
   0xe   :  { %373 = vmatpush.bf16.msra.mxu0 %v637_v12  ;;  %v641_v38 = vld [vmem:[%s853_s1 + $0x40] sm:$0xff]  ;;  %v459_v41 = vor.u32 %v631_v32, %v458_v31  ;;  %v463_v43 = vor.u32 %v629_v36, %v460_v37  ;;  %v671_v44 = vld [vmem:[%s853_s1 + $0x130] sm:$0xff]  ;;  %v670_v46 = vld [vmem:[%s853_s1 + $0x128] sm:$0xff] }
   0xf   :  { %401 = vmatpush.bf16.msra.mxu2 %v653_v13  ;;  %v628_v39 = vld [vmem:[%s855_s0 + $0x4] sm:$0xf]  ;;  %v668_v48 = vld [vmem:[%s853_s1 + $0x118] sm:$0xff]  ;;  %v667_v49 = vld [vmem:[%s853_s1 + $0x110] sm:$0xff] }
  0x10   :  { %415 = vmatpush.bf16.msra.mxu3 %v661_v14  ;;  %v455_v45 = vor.u32 %v628_v39, %v452_v40  ;;  %v669_v47 = vld [vmem:[%s853_s1 + $0x120] sm:$0xff]  ;;  %v666_v50 = vld [vmem:[%s853_s1 + $0x108] sm:$0xff]  ;;  %v466_v52 = vld [vmem:[%s855_s0 + $0x10] sm:$0xf] }
  0x11   :  { %387 = vmatpush.bf16.msra.mxu1 %v645_v15  ;;  %v665_v51 = vld [vmem:[%s853_s1 + $0x100] sm:$0xff] }
  0x12   :  { %374 = vmatpush.bf16.msra.mxu0 %v636_v16  ;;  %v632_v53 = vld [vmem:[%s855_s0 + $0x20] sm:$0xf0]  ;;  %v673_v56 = vld [vmem:[%s854_s2] ss:$0 sm:$0xff] }
  0x13   :  { %402 = vmatpush.bf16.msra.mxu2 %v652_v17  ;;  %v467_v54 = vor.u32 %v632_v53, %v466_v52 }
  0x14   :  { %416 = vmatpush.bf16.msra.mxu3 %v660_v18 }
  0x15   :  { %388 = vmatpush.bf16.msra.mxu1 %v644_v19 }
  0x16   :  { %375 = vmatpush.bf16.msra.mxu0 %v635_v20 }
  0x17   :  { %403 = vmatpush.bf16.msra.mxu2 %v651_v21 }
  0x18   :  { %417 = vmatpush.bf16.msra.mxu3 %v659_v22 }
  0x19   :  { %389 = vmatpush.bf16.msra.mxu1 %v643_v23 }
  0x1a   :  { %376 = vmatpush.bf16.msra.mxu0 %v634_v24 }
  0x1b   :  { %404 = vmatpush.bf16.msra.mxu2 %v650_v25 }
  0x1c   :  { %418 = vmatpush.bf16.msra.mxu3 %v658_v26 }
  0x1d   :  { %390 = vmatpush.bf16.msra.mxu1 %v642_v27 }
  0x1e   :  { %377 = vmatpush.bf16.msra.mxu0 %v633_v28 }
  0x1f   :  { %405 = vmatpush.bf16.msra.mxu2 %v649_v30 }
  0x20   :  { %419 = vmatpush.bf16.msra.mxu3 %v657_v35 }
  0x21   :  { %391 = vmatpush.bf16.msra.mxu1 %v641_v38  ;;  %378 = vmatmul.bf16.vlgmr.msra.gmra.mxu0 %v451_v42 }
  0x22   :  { %426 = vmatpush.bf16.msrb.mxu0 %v672_v29  ;;  %406 = vmatmul.bf16.vlgmr.msra.gmra.mxu2 %v459_v41 }
  0x23   :  { %420 = vmatmul.bf16.vlgmr.msra.gmra.mxu3 %v463_v43 }
  0x24   :  { %392 = vmatmul.bf16.vlgmr.msra.gmra.mxu1 %v455_v45 }
  0x26   :  { %427 = vmatpush.bf16.msrb.mxu0 %v671_v44 }
  0x2a   :  { %428 = vmatpush.bf16.msrb.mxu0 %v670_v46 }
  0x2e   :  { %429 = vmatpush.bf16.msrb.mxu0 %v669_v47 }
  0x32   :  { %430 = vmatpush.bf16.msrb.mxu0 %v668_v48 }
  0x36   :  { %431 = vmatpush.bf16.msrb.mxu0 %v667_v49 }
  0x3a   :  { %432 = vmatpush.bf16.msrb.mxu0 %v666_v50 }
  0x3e   :  { %433 = vmatpush.bf16.msrb.mxu0 %v665_v51 }
  0x41   :  { %434 = vmatmul.bf16.vlgmr.msrb.gmra.mxu0 %v467_v54 }
  0x9e   :  { %v379_v55 = vpop.f32.mrf.mxu0 }
  0x9f   :  { %v380_v58 = vadd.f32 %v673_v56, %v379_v55 }
  0xa1   :  { %v393_v57 = vpop.f32.mrf.mxu1 }
  0xa2   :  { %v394_v60 = vadd.f32 %v393_v57, %v380_v58 }
  0xa5   :  { %v407_v59 = vpop.f32.mrf.mxu2 }
  0xa6   :  { %v381_v61 = vpop.f32.mrf.mxu0  ;;  %v421_v62 = vpop.f32.mrf.mxu3  ;;  %v408_v63 = vadd.f32 %v407_v59, %v394_v60 }
  0xa7   :  { %v382_v0 = vadd.f32 %v673_v56, %v381_v61 }
  0xa8   :  { %v422_v2 = vadd.f32 %v421_v62, %v408_v63 }
  0xa9   :  { %v395_v1 = vpop.f32.mrf.mxu1 }
  0xaa   :  { %v396_v3 = vadd.f32 %v395_v1, %v382_v0 }
  0xad   :  { %v409_v4 = vpop.f32.mrf.mxu2 }
  0xae   :  { %v410_v7 = vadd.f32 %v409_v4, %v396_v3  ;;  %v423_v9 = vpop.f32.mrf.mxu3 }
  0xb0   :  { %v424_v10 = vadd.f32 %v423_v9, %v410_v7 }
  0xbe   :  { %v435_v5 = vpop.f32.mrf.mxu0 }
  0xbf   :  { %v436_v6 = vadd.f32 %v435_v5, %v422_v2 }
  0xc1   :  { %v440_v8 = vmax.f32 %v436_v6, 0.0 }
  0xc3   :  { %442 = vst [vmem:[%s856_s3] sm:$0xff] %v440_v8 }
  0xc6   :  { %v437_v11 = vpop.f32.mrf.mxu0 }
  0xc7   :  { %v438_v12 = vadd.f32 %v437_v11, %v424_v10 }
  0xc9   :  { %v441_v13 = vmax.f32 %v438_v12, 0.0 }
  0xcb   :  { %443 = vst [vmem:[%s856_s3 + $0x8] sm:$0xff] %v441_v13 }

</bundles_post_ra>
